<compile_context>
chip_gen: v6e
topology: v6e:2x2x1
jax: 0.10.0
libtpu: 0.0.40
codegen_flags: <defaults>
</compile_context>

<pallas_src>
import functools

import jax
import jax.numpy as jnp
from jax.experimental import pallas as pl
from jax.experimental.pallas import tpu as pltpu

EPS = 1e-5  # nn.BatchNorm1d default eps

# rows of the packed per-feature vector slab (each row padded to `lanes`)
_B1, _B2, _B3, _B4, _BB = range(5)
NUM_VEC = 5


def _batchnorm(x):
    # training-mode BatchNorm1d with default affine (gamma=1, beta=0):
    # batch stats, biased variance, two-pass (x-mu)^2 for precision.
    mu = jnp.mean(x, axis=0, keepdims=True)
    d = x - mu
    var = jnp.mean(d * d, axis=0, keepdims=True)
    return d * jax.lax.rsqrt(var + EPS)


def lex_q_kernel(x_ref, vec_ref, w1_ref, w2_ref, w3_ref, w4_ref, wh_ref, o_ref,
                 *, hidden, head_pad):
    relu = lambda t: jnp.maximum(t, 0.0)
    # bf16 operands on the MXU, f32 accumulation
    dot = lambda a, w: jnp.dot(a.astype(jnp.bfloat16), w,
                               preferred_element_type=jnp.float32)
    row = lambda r, w: vec_ref[r:r + 1, 0:w]  # (1, w) static slice of the slab

    x = x_ref[...]

    # ---- input BatchNorm1d (training mode, fresh-module affine) ----
    xn = _batchnorm(x)

    # ---- common_forward MLP trunk ----
    z = relu(dot(xn, w1_ref[...]) + row(_B1, hidden))
    y = relu(dot(z, w2_ref[...]) + row(_B2, hidden))
    y = relu(dot(y, w3_ref[...]) + row(_B3, hidden))
    z = z + relu(dot(y, w4_ref[...]) + row(_B4, hidden))

    # ---- hidden BatchNorm1d ----
    z = _batchnorm(z)

    # project(): ort_k + prj_k = ort_k + (z - ort_k) = z in forward values
    # (detach only matters for gradients), so the P2/P3 projection matmuls and
    # the WW^T linear solve are dead work and dropped here.

    # ---- fused, interleaved heads: column 3*a + h = head (h+1), action a ----
    h = dot(z, wh_ref[...]) + row(_BB, head_pad)
    col = jax.lax.broadcasted_iota(jnp.int32, h.shape, 1)
    # sigmoid(.) - 1 applies only to layerb1 columns (every 3rd lane).
    # Padded lanes (zero weight/bias) stay finite and are sliced off outside.
    o_ref[...] = jnp.where(col % 3 == 0, jax.nn.sigmoid(h) - 1.0, h)


def lex_q_forward(x, params, n_actions):
    B, n_obs = x.shape
    hidden = params["w1"].shape[1]        # padded hidden (multiple of 128)
    head_pad = params["wh"].shape[1]      # padded fused-head width (x128)

    kernel = functools.partial(lex_q_kernel, hidden=hidden, head_pad=head_pad)
    args = [x, params["vecs"], params["w1"], params["w2"], params["w3"],
            params["w4"], params["wh"]]

    flops = 2 * B * (n_obs * hidden + 3 * hidden * hidden + hidden * head_pad)
    transcendentals = B * head_pad + n_obs + hidden      # sigmoids + BN rsqrts
    bytes_accessed = (sum(int(a.size) * a.dtype.itemsize for a in args)
                      + B * head_pad * 4)

    vmem = lambda: pl.BlockSpec(memory_space=pltpu.MemorySpace.VMEM)
    out = pl.pallas_call(
        kernel,
        out_shape=jax.ShapeDtypeStruct((B, head_pad), jnp.float32),
        in_specs=[vmem() for _ in args],
        out_specs=vmem(),
        cost_estimate=pl.CostEstimate(flops=flops,
                                      transcendentals=transcendentals,
                                      bytes_accessed=bytes_accessed),
    )(*args)

    # interleaved columns -> torch.stack((o1,o2,o3), dim=2): layout-free reshape
    return out[:, :3 * n_actions].reshape(B, n_actions, 3)


def init_params(key, n_obs, n_actions, hidden):
    ks = jax.random.split(key, 7)

    def linear(k, fan_in, fan_out):
        kw, kb = jax.random.split(k)
        bound = 1.0 / float(fan_in) ** 0.5
        W = jax.random.uniform(kw, (fan_out, fan_in), jnp.float32, -bound, bound)
        b = jax.random.uniform(kb, (fan_out,), jnp.float32, -bound, bound)
        return W, b

    W1, b1 = linear(ks[0], n_obs, hidden)
    W2, b2 = linear(ks[1], hidden, hidden)
    W3, b3 = linear(ks[2], hidden, hidden)
    W4, b4 = linear(ks[3], hidden, hidden)
    Wb1, bb1 = linear(ks[4], hidden, n_actions)
    Wb2, bb2 = linear(ks[5], hidden, n_actions)
    Wb3, bb3 = linear(ks[6], hidden, n_actions)

    # pad hidden and the fused head to multiples of 128 lanes; padded
    # columns/rows are zero so they carry exact zeros through the trunk and
    # the per-feature BatchNorm, and the head pad never sees garbage.
    Hp = -(-hidden // 128) * 128
    head_pad = -(-(3 * n_actions) // 128) * 128

    def pad2(W, r, c):
        return jnp.pad(W, ((0, r - W.shape[0]), (0, c - W.shape[1])))

    # Linear weights transposed to (in, out) for x @ W, zero-padded.
    w1 = pad2(W1.T, n_obs, Hp)
    w2 = pad2(W2.T, Hp, Hp)
    w3 = pad2(W3.T, Hp, Hp)
    w4 = pad2(W4.T, Hp, Hp)

    # fused, INTERLEAVED head: output column 3*a + h holds head (h+1), action a
    Wh = jnp.stack((Wb1.T, Wb2.T, Wb3.T), axis=2).reshape(hidden, 3 * n_actions)
    bb = jnp.stack((bb1, bb2, bb3), axis=1).reshape(3 * n_actions)
    wh = pad2(Wh, Hp, head_pad)

    # Pack all small bias vectors into one (NUM_VEC, lanes) f32 slab -> one DMA.
    lanes = max(Hp, head_pad)
    padv = lambda v: jnp.pad(v, (0, lanes - v.shape[0]))
    vecs = jnp.stack([padv(b1), padv(b2), padv(b3), padv(b4), padv(bb)], axis=0)
    assert vecs.shape == (NUM_VEC, lanes)

    bf16 = lambda w: w.astype(jnp.bfloat16)
    return dict(vecs=vecs, w1=bf16(w1), w2=bf16(w2), w3=bf16(w3), w4=bf16(w4),
                wh=bf16(wh))


if __name__ == "__main__":
    # module default hidden=128 (128-aligned), batch multiple of 8
    B, n_obs, hidden, n_actions = 8, 16, 128, 4

    key = jax.random.PRNGKey(0)
    kx, kp = jax.random.split(key)
    x = jax.random.normal(kx, (B, n_obs), jnp.float32)
    params = init_params(kp, n_obs, n_actions, hidden)

    out = lex_q_forward(x, params, n_actions)
    jax.block_until_ready(out)
    assert out.shape == (B, n_actions, 3) and out.dtype == jnp.float32
    assert bool(jnp.all(jnp.isfinite(out)))
    print("KERNEL_OK")
</pallas_src>

<mosaic_0001>
module attributes {stable_mosaic.version = 11 : i64} {
  func.func @lex_q_kernel(%arg0: memref<8x16xf32, #tpu.memory_space<vmem>>, %arg1: memref<5x128xf32, #tpu.memory_space<vmem>>, %arg2: memref<16x128xbf16, #tpu.memory_space<vmem>>, %arg3: memref<128x128xbf16, #tpu.memory_space<vmem>>, %arg4: memref<128x128xbf16, #tpu.memory_space<vmem>>, %arg5: memref<128x128xbf16, #tpu.memory_space<vmem>>, %arg6: memref<128x128xbf16, #tpu.memory_space<vmem>>, %arg7: memref<8x128xf32, #tpu.memory_space<vmem>>) attributes {dimension_semantics = [], scalar_prefetch = 0 : i64, scratch_operands = 0 : i64, tpu.core_type = #tpu.core_type<tc>} {
    %c0 = arith.constant 0 : index
    %c0_0 = arith.constant 0 : index
    %0 = vector.load %arg0[%c0, %c0_0] : memref<8x16xf32, #tpu.memory_space<vmem>>, vector<8x16xf32>
    %cst = arith.constant dense<0.000000e+00> : vector<16xf32>
    %1 = vector.multi_reduction <add>, %0, %cst [0] : vector<8x16xf32> to vector<16xf32>
    %2 = vector.shape_cast %1 : vector<16xf32> to vector<1x16xf32>
    %cst_1 = arith.constant 8.000000e+00 : f32
    %3 = vector.broadcast %cst_1 : f32 to vector<1x16xf32>
    %4 = arith.divf %2, %3 : vector<1x16xf32>
    %5 = vector.broadcast %4 : vector<1x16xf32> to vector<8x16xf32>
    %6 = arith.subf %0, %5 : vector<8x16xf32>
    %7 = arith.mulf %6, %6 : vector<8x16xf32>
    %cst_2 = arith.constant dense<0.000000e+00> : vector<16xf32>
    %8 = vector.multi_reduction <add>, %7, %cst_2 [0] : vector<8x16xf32> to vector<16xf32>
    %9 = vector.shape_cast %8 : vector<16xf32> to vector<1x16xf32>
    %cst_3 = arith.constant 8.000000e+00 : f32
    %10 = vector.broadcast %cst_3 : f32 to vector<1x16xf32>
    %11 = arith.divf %9, %10 : vector<1x16xf32>
    %cst_4 = arith.constant 9.99999974E-6 : f32
    %12 = vector.broadcast %cst_4 : f32 to vector<1x16xf32>
    %13 = arith.addf %11, %12 : vector<1x16xf32>
    %14 = math.rsqrt %13 : vector<1x16xf32>
    %15 = vector.broadcast %14 : vector<1x16xf32> to vector<8x16xf32>
    %16 = arith.mulf %6, %15 : vector<8x16xf32>
    %c0_5 = arith.constant 0 : index
    %c0_6 = arith.constant 0 : index
    %17 = vector.load %arg2[%c0_5, %c0_6] : memref<16x128xbf16, #tpu.memory_space<vmem>>, vector<16x128xbf16>
    %18 = arith.truncf %16 : vector<8x16xf32> to vector<8x16xbf16>
    %cst_7 = arith.constant dense<0.000000e+00> : vector<8x128xf32>
    %19 = tpu.matmul %18, %17, %cst_7 {dimension_numbers = #tpu.dot_dimension_numbers<[1], [0], [0], [1], [0, 0, 1, 1], [], []>} : vector<8x16xbf16>, vector<16x128xbf16>, vector<8x128xf32> -> vector<8x128xf32>
    %c0_8 = arith.constant 0 : index
    %c0_9 = arith.constant 0 : index
    %20 = vector.load %arg1[%c0_8, %c0_9] : memref<5x128xf32, #tpu.memory_space<vmem>>, vector<1x128xf32>
    %21 = vector.broadcast %20 : vector<1x128xf32> to vector<8x128xf32>
    %22 = arith.addf %19, %21 : vector<8x128xf32>
    %cst_10 = arith.constant 0.000000e+00 : f32
    %23 = vector.broadcast %cst_10 : f32 to vector<8x128xf32>
    %24 = arith.maximumf %22, %23 : vector<8x128xf32>
    %c0_11 = arith.constant 0 : index
    %c0_12 = arith.constant 0 : index
    %25 = vector.load %arg3[%c0_11, %c0_12] : memref<128x128xbf16, #tpu.memory_space<vmem>>, vector<128x128xbf16>
    %26 = arith.truncf %24 : vector<8x128xf32> to vector<8x128xbf16>
    %cst_13 = arith.constant dense<0.000000e+00> : vector<8x128xf32>
    %27 = tpu.matmul %26, %25, %cst_13 {dimension_numbers = #tpu.dot_dimension_numbers<[1], [0], [0], [1], [0, 0, 1, 1], [], []>} : vector<8x128xbf16>, vector<128x128xbf16>, vector<8x128xf32> -> vector<8x128xf32>
    %c1 = arith.constant 1 : index
    %c0_14 = arith.constant 0 : index
    %28 = vector.load %arg1[%c1, %c0_14] : memref<5x128xf32, #tpu.memory_space<vmem>>, vector<1x128xf32>
    %29 = vector.broadcast %28 : vector<1x128xf32> to vector<8x128xf32>
    %30 = arith.addf %27, %29 : vector<8x128xf32>
    %cst_15 = arith.constant 0.000000e+00 : f32
    %31 = vector.broadcast %cst_15 : f32 to vector<8x128xf32>
    %32 = arith.maximumf %30, %31 : vector<8x128xf32>
    %c0_16 = arith.constant 0 : index
    %c0_17 = arith.constant 0 : index
    %33 = vector.load %arg4[%c0_16, %c0_17] : memref<128x128xbf16, #tpu.memory_space<vmem>>, vector<128x128xbf16>
    %34 = arith.truncf %32 : vector<8x128xf32> to vector<8x128xbf16>
    %cst_18 = arith.constant dense<0.000000e+00> : vector<8x128xf32>
    %35 = tpu.matmul %34, %33, %cst_18 {dimension_numbers = #tpu.dot_dimension_numbers<[1], [0], [0], [1], [0, 0, 1, 1], [], []>} : vector<8x128xbf16>, vector<128x128xbf16>, vector<8x128xf32> -> vector<8x128xf32>
    %c2 = arith.constant 2 : index
    %c0_19 = arith.constant 0 : index
    %36 = vector.load %arg1[%c2, %c0_19] : memref<5x128xf32, #tpu.memory_space<vmem>>, vector<1x128xf32>
    %37 = vector.broadcast %36 : vector<1x128xf32> to vector<8x128xf32>
    %38 = arith.addf %35, %37 : vector<8x128xf32>
    %cst_20 = arith.constant 0.000000e+00 : f32
    %39 = vector.broadcast %cst_20 : f32 to vector<8x128xf32>
    %40 = arith.maximumf %38, %39 : vector<8x128xf32>
    %c0_21 = arith.constant 0 : index
    %c0_22 = arith.constant 0 : index
    %41 = vector.load %arg5[%c0_21, %c0_22] : memref<128x128xbf16, #tpu.memory_space<vmem>>, vector<128x128xbf16>
    %42 = arith.truncf %40 : vector<8x128xf32> to vector<8x128xbf16>
    %cst_23 = arith.constant dense<0.000000e+00> : vector<8x128xf32>
    %43 = tpu.matmul %42, %41, %cst_23 {dimension_numbers = #tpu.dot_dimension_numbers<[1], [0], [0], [1], [0, 0, 1, 1], [], []>} : vector<8x128xbf16>, vector<128x128xbf16>, vector<8x128xf32> -> vector<8x128xf32>
    %c3 = arith.constant 3 : index
    %c0_24 = arith.constant 0 : index
    %44 = vector.load %arg1[%c3, %c0_24] : memref<5x128xf32, #tpu.memory_space<vmem>>, vector<1x128xf32>
    %45 = vector.broadcast %44 : vector<1x128xf32> to vector<8x128xf32>
    %46 = arith.addf %43, %45 : vector<8x128xf32>
    %cst_25 = arith.constant 0.000000e+00 : f32
    %47 = vector.broadcast %cst_25 : f32 to vector<8x128xf32>
    %48 = arith.maximumf %46, %47 : vector<8x128xf32>
    %49 = arith.addf %24, %48 : vector<8x128xf32>
    %cst_26 = arith.constant dense<0.000000e+00> : vector<128xf32>
    %50 = vector.multi_reduction <add>, %49, %cst_26 [0] : vector<8x128xf32> to vector<128xf32>
    %51 = vector.shape_cast %50 : vector<128xf32> to vector<1x128xf32>
    %cst_27 = arith.constant 8.000000e+00 : f32
    %52 = vector.broadcast %cst_27 : f32 to vector<1x128xf32>
    %53 = arith.divf %51, %52 : vector<1x128xf32>
    %54 = vector.broadcast %53 : vector<1x128xf32> to vector<8x128xf32>
    %55 = arith.subf %49, %54 : vector<8x128xf32>
    %56 = arith.mulf %55, %55 : vector<8x128xf32>
    %cst_28 = arith.constant dense<0.000000e+00> : vector<128xf32>
    %57 = vector.multi_reduction <add>, %56, %cst_28 [0] : vector<8x128xf32> to vector<128xf32>
    %58 = vector.shape_cast %57 : vector<128xf32> to vector<1x128xf32>
    %cst_29 = arith.constant 8.000000e+00 : f32
    %59 = vector.broadcast %cst_29 : f32 to vector<1x128xf32>
    %60 = arith.divf %58, %59 : vector<1x128xf32>
    %cst_30 = arith.constant 9.99999974E-6 : f32
    %61 = vector.broadcast %cst_30 : f32 to vector<1x128xf32>
    %62 = arith.addf %60, %61 : vector<1x128xf32>
    %63 = math.rsqrt %62 : vector<1x128xf32>
    %64 = vector.broadcast %63 : vector<1x128xf32> to vector<8x128xf32>
    %65 = arith.mulf %55, %64 : vector<8x128xf32>
    %c0_31 = arith.constant 0 : index
    %c0_32 = arith.constant 0 : index
    %66 = vector.load %arg6[%c0_31, %c0_32] : memref<128x128xbf16, #tpu.memory_space<vmem>>, vector<128x128xbf16>
    %67 = arith.truncf %65 : vector<8x128xf32> to vector<8x128xbf16>
    %cst_33 = arith.constant dense<0.000000e+00> : vector<8x128xf32>
    %68 = tpu.matmul %67, %66, %cst_33 {dimension_numbers = #tpu.dot_dimension_numbers<[1], [0], [0], [1], [0, 0, 1, 1], [], []>} : vector<8x128xbf16>, vector<128x128xbf16>, vector<8x128xf32> -> vector<8x128xf32>
    %c4 = arith.constant 4 : index
    %c0_34 = arith.constant 0 : index
    %69 = vector.load %arg1[%c4, %c0_34] : memref<5x128xf32, #tpu.memory_space<vmem>>, vector<1x128xf32>
    %70 = vector.broadcast %69 : vector<1x128xf32> to vector<8x128xf32>
    %71 = arith.addf %68, %70 : vector<8x128xf32>
    %72 = tpu.iota {dimensions = array<i32: 1>} : vector<8x128xi32>
    %c3_i32 = arith.constant 3 : i32
    %c0_i32 = arith.constant 0 : i32
    %73 = arith.cmpi eq, %c3_i32, %c0_i32 : i32
    %c1_i32 = arith.constant 1 : i32
    %74 = arith.select %73, %c1_i32, %c3_i32 : i32
    %75 = vector.broadcast %74 : i32 to vector<8x128xi32>
    %76 = arith.remsi %72, %75 : vector<8x128xi32>
    %c0_i32_35 = arith.constant 0 : i32
    %77 = vector.broadcast %c0_i32_35 : i32 to vector<8x128xi32>
    %78 = arith.cmpi ne, %76, %77 : vector<8x128xi32>
    %c0_i32_36 = arith.constant 0 : i32
    %79 = vector.broadcast %c0_i32_36 : i32 to vector<8x128xi32>
    %80 = arith.cmpi slt, %76, %79 : vector<8x128xi32>
    %c0_i32_37 = arith.constant 0 : i32
    %81 = arith.cmpi slt, %74, %c0_i32_37 : i32
    %82 = vector.broadcast %81 : i1 to vector<8x128xi1>
    %83 = vector.broadcast %82 : vector<8x128xi1> to vector<8x128xi1>
    %84 = arith.xori %80, %83 : vector<8x128xi1>
    %85 = arith.andi %84, %78 : vector<8x128xi1>
    %86 = vector.broadcast %74 : i32 to vector<8x128xi32>
    %87 = arith.addi %76, %86 : vector<8x128xi32>
    %88 = arith.select %85, %87, %76 : vector<8x128xi1>, vector<8x128xi32>
    %c0_i32_38 = arith.constant 0 : i32
    %89 = vector.broadcast %c0_i32_38 : i32 to vector<8x128xi32>
    %90 = arith.cmpi eq, %88, %89 : vector<8x128xi32>
    %91 = arith.negf %71 : vector<8x128xf32>
    %92 = math.exp %91 : vector<8x128xf32>
    %cst_39 = arith.constant 1.000000e+00 : f32
    %93 = vector.broadcast %cst_39 : f32 to vector<8x128xf32>
    %94 = arith.addf %93, %92 : vector<8x128xf32>
    %95 = arith.divf %93, %94 : vector<8x128xf32>
    %cst_40 = arith.constant 1.000000e+00 : f32
    %96 = vector.broadcast %cst_40 : f32 to vector<8x128xf32>
    %97 = arith.subf %95, %96 : vector<8x128xf32>
    %98 = arith.select %90, %97, %71 : vector<8x128xi1>, vector<8x128xf32>
    %c0_41 = arith.constant 0 : index
    %c0_42 = arith.constant 0 : index
    %99 = vector.load %arg7[%c0_41, %c0_42] : memref<8x128xf32, #tpu.memory_space<vmem>>, vector<8x128xf32>
    tpu.vector_store %arg7[%c0_41, %c0_42], %98 {strides = array<i32>} : memref<8x128xf32, #tpu.memory_space<vmem>>, vector<8x128xf32>,
    return
  }
}

</mosaic_0001>

<bundles_post_ra>
// kernel: tpu_custom_call.1
= control target key start
LH: loop header
LB: loop body
LE: loop exit
PB: predicated region body
PF: predicated region fallthrough
CT: control target
= control target key end

     0   :  { %12 = vsyncpa [#allocation3], 0  ;;  %s1246_s0 = inlined_call_operand.hbm [shape: f32[8,16], index: 0, kind: input, shape index: {}]   ;;  %s1247_s1 = inlined_call_operand.hbm [shape: f32[5,128], index: 1, kind: input, shape index: {}]   ;;  %s1248_s2 = inlined_call_operand.hbm [shape: bf16[16,128], index: 2, kind: input, shape index: {}]   ;;  %s1249_s3 = inlined_call_operand.hbm [shape: bf16[128,128], index: 3, kind: input, shape index: {}]   ;;  %s1250_s4 = inlined_call_operand.hbm [shape: bf16[128,128], index: 4, kind: input, shape index: {}]   ;;  %s1251_s5 = inlined_call_operand.hbm [shape: bf16[128,128], index: 5, kind: input, shape index: {}]   ;;  %s1252_s6 = inlined_call_operand.hbm [shape: bf16[128,128], index: 6, kind: input, shape index: {}]   ;;  %s1253_s7 = inlined_call_operand.hbm [shape: f32[8,128], index: 7, kind: output, shape index: {}]  }
   0x1   :  { %13 = vsyncpa [#allocation6], 0 }
   0x2   :  { %14 = vsyncpa [#allocation9], 0 }
   0x3   :  { %15 = vsyncpa [#allocation12], 0 }
   0x4   :  { %16 = vsyncpa [#allocation4], 0  ;;  %s1100_s24 = smov [#allocation5]  }
   0x5   :  { %s33_s25 = sshll.u32 %s1100_s24, 4  ;;  %s34_s25 = int_to_ptr.vmem [resolvable:$true] %s33_s25 }
   0x6   :  { %s938_s26 = scalar_lea.vmem %s34_s25, 128  ;;  %p943_p1 = scmp.lt.s32.totalorder %s34_s25, %s34_s25 }
   0x7   :  { %p939_p0 = scmp.ne.s32.totalorder %s34_s25, %s938_s26  ;;  %p944_p2 = scmp.lt.s32.totalorder %s938_s26, %s938_s26 }
   0x9   :  { %p945_p3 = por %p944_p2, %p943_p1 }
   0xb   :  { %p946_p4 = pnand %p945_p3, %p939_p0 }
   0xd   :  { %949 = shalt.err (!%p946_p4)
}
   0xe   :  { %36 = dma.hbm_to_vmem [thread:$0]  %s1247_s1, 128, %s34_s25, [#allocation6]  }
   0xf   :  { %s1101_s29 = smov [#allocation8]   ;;  %s1102_s8 = smov [#allocation11]  }
  0x10   :  { %s54_s30 = sshll.u32 %s1101_s29, 4  ;;  %s78_s9 = sshll.u32 %s1102_s8, 4  ;;  %s55_s30 = int_to_ptr.vmem [resolvable:$true] %s54_s30  ;;  %s79_s9 = int_to_ptr.vmem [resolvable:$true] %s78_s9 }
  0x11   :  { %s958_s10 = scalar_lea.vmem %s55_s30, 1024  ;;  %p963_p6 = scmp.lt.s32.totalorder %s55_s30, %s55_s30 }
  0x12   :  { %p959_p5 = scmp.ne.s32.totalorder %s55_s30, %s958_s10  ;;  %p964_p7 = scmp.lt.s32.totalorder %s958_s10, %s958_s10 }
  0x14   :  { %p965_p8 = por %p964_p7, %p963_p6 }
  0x16   :  { %p966_p9 = pnand %p965_p8, %p959_p5 }
  0x18   :  { %969 = shalt.err (!%p966_p9)
}
  0x19   :  { %s1103_s11 = smov 64   ;;  %s1104_s12 = smov 4  }
  0x1a   :  { %60 = dma.hbm_to_vmem [thread:$0]  %s1249_s3, 1024, %s55_s30, [#allocation9], %s1103_s11, %s1103_s11, %s1104_s12  }
  0x1b   :  { %s978_s1 = scalar_lea.vmem %s79_s9, 1024  ;;  %p983_p11 = scmp.lt.s32.totalorder %s79_s9, %s79_s9 }
  0x1c   :  { %p979_p10 = scmp.ne.s32.totalorder %s79_s9, %s978_s1  ;;  %p984_p12 = scmp.lt.s32.totalorder %s978_s1, %s978_s1 }
  0x1e   :  { %p985_p13 = por %p984_p12, %p983_p11 }
  0x20   :  { %p986_p0 = pnand %p985_p13, %p979_p10 }
  0x22   :  { %989 = shalt.err (!%p986_p0)
}
  0x23   :  { %84 = dma.hbm_to_vmem [thread:$0]  %s1251_s5, 1024, %s79_s9, [#allocation12], %s1103_s11, %s1103_s11, %s1104_s12  }
  0x24   :  { %s1105_s17 = smov [#allocation2]   ;;  %s1106_s19 = smov [#allocation7]  }
  0x25   :  { %s23_s18 = sshll.u32 %s1105_s17, 4  ;;  %s42_s3 = sshll.u32 %s1106_s19, 4  ;;  %s24_s18 = int_to_ptr.vmem [resolvable:$true] %s23_s18  ;;  %s43_s3 = int_to_ptr.vmem [resolvable:$true] %s42_s3 }
  0x26   :  { %s998_s20 = scalar_lea.vmem %s24_s18, 128  ;;  %p1003_p2 = scmp.lt.s32.totalorder %s24_s18, %s24_s18 }
  0x27   :  { %p999_p1 = scmp.ne.s32.totalorder %s24_s18, %s998_s20  ;;  %p1004_p3 = scmp.lt.s32.totalorder %s998_s20, %s998_s20 }
  0x29   :  { %p1005_p4 = por %p1004_p3, %p1003_p2 }
  0x2b   :  { %p1006_p5 = pnand %p1005_p4, %p999_p1 }
  0x2d   :  { %1009 = shalt.err (!%p1006_p5)
}
  0x2e   :  { %26 = dma.hbm_to_vmem [thread:$0]  %s1246_s0, 128, %s24_s18, [#allocation3]  }
  0x2f   :  { %s1018_s23 = scalar_lea.vmem %s43_s3, 128  ;;  %p1023_p7 = scmp.lt.s32.totalorder %s43_s3, %s43_s3 }
  0x30   :  { %p1019_p6 = scmp.ne.s32.totalorder %s43_s3, %s1018_s23  ;;  %p1024_p8 = scmp.lt.s32.totalorder %s1018_s23, %s1018_s23 }
  0x32   :  { %p1025_p9 = por %p1024_p8, %p1023_p7 }
  0x34   :  { %p1026_p10 = pnand %p1025_p9, %p1019_p6 }
  0x36   :  { %1029 = shalt.err (!%p1026_p10)
}
  0x37   :  { %48 = dma.hbm_to_vmem [thread:$0]  %s1248_s2, 128, %s43_s3, [#allocation6], %s1103_s11, %s1103_s11, %s1104_s12  }
  0x38   :  { %s1107_s25 = smov [#allocation10]   ;;  %s1108_s27 = smov [#allocation13]  }
  0x39   :  { %s66_s26 = sshll.u32 %s1107_s25, 4  ;;  %s90_s0 = sshll.u32 %s1108_s27, 4  ;;  %s67_s26 = int_to_ptr.vmem [resolvable:$true] %s66_s26  ;;  %s91_s0 = int_to_ptr.vmem [resolvable:$true] %s90_s0 }
  0x3a   :  { %s1038_s28 = scalar_lea.vmem %s67_s26, 1024  ;;  %p1043_p12 = scmp.lt.s32.totalorder %s67_s26, %s67_s26 }
  0x3b   :  { %p1039_p11 = scmp.ne.s32.totalorder %s67_s26, %s1038_s28  ;;  %p1044_p13 = scmp.lt.s32.totalorder %s1038_s28, %s1038_s28 }
  0x3d   :  { %p1045_p0 = por %p1044_p13, %p1043_p12 }
  0x3f   :  { %p1046_p1 = pnand %p1045_p0, %p1039_p11 }
  0x41   :  { %1049 = shalt.err (!%p1046_p1)
}
  0x42   :  { %72 = dma.hbm_to_vmem [thread:$0]  %s1250_s4, 1024, %s67_s26, [#allocation9], %s1103_s11, %s1103_s11, %s1104_s12  }
  0x43   :  { %s1058_s2 = scalar_lea.vmem %s91_s0, 1024  ;;  %p1063_p3 = scmp.lt.s32.totalorder %s91_s0, %s91_s0 }
  0x44   :  { %p1059_p2 = scmp.ne.s32.totalorder %s91_s0, %s1058_s2  ;;  %p1064_p4 = scmp.lt.s32.totalorder %s1058_s2, %s1058_s2 }
  0x46   :  { %p1065_p5 = por %p1064_p4, %p1063_p3 }
  0x48   :  { %p1066_p6 = pnand %p1065_p5, %p1059_p2 }
  0x4a   :  { %1069 = shalt.err (!%p1066_p6)
}
  0x4b   :  { %96 = dma.hbm_to_vmem [thread:$0]  %s1252_s6, 1024, %s91_s0, [#allocation12], %s1103_s11, %s1103_s11, %s1104_s12  }
  0x4c   :  { %1090 = dma.done.wait [#allocation3], 128  }
  0x4d   :  { %1091 = vsyncadd [#allocation3], 4294967168 }
  0x4e   :  { %1092 = dma.done.wait [#allocation6], 256  }
  0x4f   :  { %1093 = vsyncadd [#allocation6], 4294967040 }
  0x50   :  { %1094 = dma.done.wait [#allocation9], 2048  }
  0x51   :  { %1095 = vsyncadd [#allocation9], 4294965248 }
  0x52   :  { %1096 = dma.done.wait [#allocation12], 2048  }
  0x53   :  { %1097 = vsyncadd [#allocation12], 4294965248  ;;  %v1109_v0 = vmov 0.0   ;;  %vm1110_vm0 = vmmov 0   ;;  %vm120_vm1 = vcmask 130048   ;;  %v889_v1 = vld [vmem:[#allocation7] sm:$0xff]  }
  0x54   :  { %789 = vmatprep.subr.bf16.mxu0 %v1109_v0  ;;  %791 = vmatprep.mubr.msk.bf16.mxu0 %vm1110_vm0, %v1109_v0  ;;  %v119_v2 = vld [vmem:[#allocation2] sm:$0xff]  ;;  %v890_v4 = vld [vmem:[#allocation8 + $0x38] sm:$0xff]   ;;  %v891_v6 = vld [vmem:[#allocation8 + $0x30] sm:$0xff]   ;;  %s1111_s4 = smov [#allocation14]  }
  0x55   :  { %795 = vmatprep.subr.bf16.mxu1 %v1109_v0  ;;  %811 = vmatprep.mubr.msk.bf16.mxu1 %vm1110_vm0, %v1109_v0  ;;  %v121_v3 = vsel %vm120_vm1, %v119_v2, 0.0  ;;  %v892_v9 = vld [vmem:[#allocation8 + $0x28] sm:$0xff]   ;;  %v893_v12 = vld [vmem:[#allocation8 + $0x20] sm:$0xff]   ;;  %v894_v15 = vld [vmem:[#allocation8 + $0x18] sm:$0xff]   ;;  %s698_s6 = sshll.u32 %s1111_s4, 4  ;;  %s699_s6 = int_to_ptr.vmem [resolvable:$true] %s698_s6 }
  0x56   :  { %790 = vmatpush3.bf16.msra.mxu0 %v889_v1  ;;  %v122_v5 = vrot.slane %v121_v3, 4  ;;  %796 = vmatpush3.bf16.msra.mxu1 %v890_v4  ;;  %v895_v17 = vld [vmem:[#allocation8 + $0x10] sm:$0xff]   ;;  %v896_v31 = vld [vmem:[#allocation8 + $0x8] sm:$0xff]   ;;  %v897_v32 = vld [vmem:[#allocation8] sm:$0xff]   ;;  %s1070_s10 = scalar_lea.vmem %s699_s6, 128  ;;  %p1075_p8 = scmp.lt.s32.totalorder %s699_s6, %s699_s6 }
  0x57   :  { %815 = vmatprep.subr.bf16.mxu0 %v1109_v0  ;;  %797 = vmatprep.subr.bf16.mxu1 %v1109_v0  ;;  %v898_v33 = vld [vmem:[#allocation10 + $0x38] sm:$0xff]   ;;  %v899_v34 = vld [vmem:[#allocation10 + $0x30] sm:$0xff]   ;;  %v900_v35 = vld [vmem:[#allocation10 + $0x28] sm:$0xff]   ;;  %p1071_p7 = scmp.ne.s32.totalorder %s699_s6, %s1070_s10  ;;  %p1076_p9 = scmp.lt.s32.totalorder %s1070_s10, %s1070_s10 }
  0x58   :  { %v123_v7 = vadd.f32 %v122_v5, %v121_v3  ;;  %v901_v36 = vld [vmem:[#allocation10 + $0x20] sm:$0xff]   ;;  %v902_v37 = vld [vmem:[#allocation10 + $0x18] sm:$0xff]   ;;  %v903_v38 = vld [vmem:[#allocation10 + $0x10] sm:$0xff]  }
  0x59   :  { %v710_v39 = vld [vmem:[#allocation5] ss:$0 sm:$0xff]  ;;  %v904_v47 = vld [vmem:[#allocation10 + $0x8] sm:$0xff]   ;;  %v905_v48 = vld [vmem:[#allocation10] sm:$0xff]   ;;  %p1077_p10 = por %p1076_p9, %p1075_p8 }
  0x5a   :  { %v124_v8 = vrot.slane %v123_v7, 2  ;;  %798 = vmatpush3.bf16.msra.mxu1 %v891_v6  ;;  %v906_v49 = vld [vmem:[#allocation11 + $0x38] sm:$0xff]   ;;  %v907_v50 = vld [vmem:[#allocation11 + $0x30] sm:$0xff]   ;;  %v908_v51 = vld [vmem:[#allocation11 + $0x28] sm:$0xff]  }
  0x5b   :  { %799 = vmatprep.subr.bf16.mxu1 %v1109_v0  ;;  %v909_v52 = vld [vmem:[#allocation11 + $0x20] sm:$0xff]   ;;  %v910_v53 = vld [vmem:[#allocation11 + $0x18] sm:$0xff]   ;;  %v911_v54 = vld [vmem:[#allocation11 + $0x10] sm:$0xff]   ;;  %p1078_p11 = pnand %p1077_p10, %p1071_p7 }
  0x5c   :  { %v125_v10 = vadd.f32 %v124_v8, %v123_v7  ;;  %v713_v55 = vld [vmem:[#allocation5 + $0x1] ss:$0 sm:$0xff]  ;;  %v912_v63 = vld [vmem:[#allocation11 + $0x8] sm:$0xff]   ;;  %v913_v1 = vld [vmem:[#allocation11] sm:$0xff]  }
  0x5e   :  { %v126_v11 = vrot.slane %v125_v10, 1  ;;  %800 = vmatpush3.bf16.msra.mxu1 %v892_v9 }
  0x5f   :  { %801 = vmatprep.subr.bf16.mxu1 %v1109_v0 }
  0x60   :  { %v127_v13 = vadd.f32 %v126_v11, %v125_v10  ;;  %v914_v10 = vld [vmem:[#allocation13 + $0x38] sm:$0xff]   ;;  %v915_v11 = vld [vmem:[#allocation13 + $0x30] sm:$0xff]  }
  0x62   :  { %v129_v14 = vmul.f32 0.125, %v127_v13  ;;  %802 = vmatpush3.bf16.msra.mxu1 %v893_v12  ;;  %v916_v12 = vld [vmem:[#allocation13 + $0x28] sm:$0xff]   ;;  %v917_v13 = vld [vmem:[#allocation13 + $0x20] sm:$0xff]  }
  0x63   :  { %803 = vmatprep.subr.bf16.mxu1 %v1109_v0 }
  0x64   :  { %v130_v16 = vsub.f32 %v119_v2, %v129_v14  ;;  %v722_v2 = vld [vmem:[#allocation5 + $0x2] ss:$0 sm:$0xff]  ;;  %v918_v14 = vld [vmem:[#allocation13 + $0x18] sm:$0xff]  }
  0x66   :  { %v131_v18 = vmul.f32 %v130_v16, %v130_v16  ;;  %804 = vmatpush3.bf16.msra.mxu1 %v894_v15  ;;  %v919_v15 = vld [vmem:[#allocation13 + $0x10] sm:$0xff]  }
  0x67   :  { %805 = vmatprep.subr.bf16.mxu1 %v1109_v0 }
  0x68   :  { %v132_v19 = vsel %vm120_vm1, %v131_v18, 0.0  ;;  %v731_v18 = vld [vmem:[#allocation5 + $0x3] ss:$0 sm:$0xff] }
  0x69   :  { %v133_v20 = vrot.slane %v132_v19, 4 }
  0x6a   :  { %806 = vmatpush3.bf16.msra.mxu1 %v895_v17  ;;  %v921_v17 = vld [vmem:[#allocation13] sm:$0xff]  }
  0x6b   :  { %v134_v21 = vadd.f32 %v133_v20, %v132_v19  ;;  %807 = vmatprep.subr.bf16.mxu1 %v1109_v0 }
  0x6d   :  { %v135_v22 = vrot.slane %v134_v21, 2 }
  0x6e   :  { %808 = vmatpush3.bf16.msra.mxu1 %v896_v31 }
  0x6f   :  { %v136_v23 = vadd.f32 %v135_v22, %v134_v21  ;;  %809 = vmatprep.subr.bf16.mxu1 %v1109_v0 }
  0x71   :  { %v137_v24 = vrot.slane %v136_v23, 1 }
  0x72   :  { %810 = vmatpush3.bf16.msra.mxu1 %v897_v32 }
  0x73   :  { %v138_v25 = vadd.f32 %v137_v24, %v136_v23  ;;  %835 = vmatprep.subr.bf16.mxu1 %v1109_v0 }
  0x75   :  { %v139_v26 = vmul.f32 0.125, %v138_v25 }
  0x77   :  { %v140_v27 = vadd.f32 1e-05, %v139_v26 }
  0x79   :  { %922 = vrsqrt.f32 %v140_v27 }
  0x86   :  { %v923_v28 = vpop.eup %922 }
  0x87   :  { %v142_v29 = vmul.f32 %v923_v28, %v130_v16  ;;  %v920_v16 = vld [vmem:[#allocation13 + $0x8] sm:$0xff]  }
  0x89   :  { %v145_v30 = vpack.c.bf16 %v142_v29, %v142_v29 }
  0x8b   :  { %792 = vmatmul.mubr.msk.bf16.vlgmr.msra.gmra.mxu0 %vm120_vm1, %v145_v30 }
  0x8c   :  { %831 = vmatprep.mubr.msk.bf16.mxu0 %vm1110_vm0, %v1109_v0  ;;  %816 = vmatpush3.bf16.msra.mxu0 %v898_v33 }
  0x8d   :  { %817 = vmatprep.subr.bf16.mxu0 %v1109_v0 }
  0x90   :  { %818 = vmatpush3.bf16.msra.mxu0 %v899_v34 }
  0x91   :  { %819 = vmatprep.subr.bf16.mxu0 %v1109_v0 }
  0x94   :  { %820 = vmatpush3.bf16.msra.mxu0 %v900_v35 }
  0x95   :  { %821 = vmatprep.subr.bf16.mxu0 %v1109_v0 }
  0x98   :  { %822 = vmatpush3.bf16.msra.mxu0 %v901_v36 }
  0x99   :  { %823 = vmatprep.subr.bf16.mxu0 %v1109_v0 }
  0x9c   :  { %824 = vmatpush3.bf16.msra.mxu0 %v902_v37 }
  0x9d   :  { %825 = vmatprep.subr.bf16.mxu0 %v1109_v0 }
  0xa0   :  { %826 = vmatpush3.bf16.msra.mxu0 %v903_v38 }
  0xa1   :  { %827 = vmatprep.subr.bf16.mxu0 %v1109_v0 }
  0xa4   :  { %828 = vmatpush3.bf16.msra.mxu0 %v904_v47 }
  0xa5   :  { %829 = vmatprep.subr.bf16.mxu0 %v1109_v0 }
  0xa8   :  { %830 = vmatpush3.bf16.msra.mxu0 %v905_v48 }
  0xa9   :  { %855 = vmatprep.subr.bf16.mxu0 %v1109_v0 }
 0x14b   :  { %v194_v40 = vpop.f32.mrf.mxu0 }
 0x14c   :  { %v195_v41 = vadd.f32 %v710_v39, %v194_v40 }
 0x14d   :  { %v793_v42 = vpop.f32.mrf.mxu0 }
 0x14e   :  { %v1214_v43 = vmax.f32 %v195_v41, 0.0 }
 0x14f   :  { %v197_v44 = vpop.f32.mrf.mxu0 }
 0x150   :  { %v217_v45 = vpack.c.bf16 %v1214_v43, %v1214_v43 }
 0x151   :  { %v794_v46 = vpop.f32.mrf.mxu0 }
 0x152   :  { %812 = vmatmul.mubr.bf16.vlgmr.msra.gmra.mxu1 %v217_v45  ;;  %v664_v45 = vlaneseq  ;;  %v740_v46 = vld [vmem:[#allocation5 + $0x4] ss:$0 sm:$0xff] }
 0x153   :  { %851 = vmatprep.mubr.msk.bf16.mxu1 %vm1110_vm0, %v1109_v0  ;;  %836 = vmatpush3.bf16.msra.mxu1 %v906_v49 }
 0x154   :  { %837 = vmatprep.subr.bf16.mxu1 %v1109_v0  ;;  %v665_v49 = vand.u32 127, %v664_v45 }
 0x157   :  { %838 = vmatpush3.bf16.msra.mxu1 %v907_v50 }
 0x158   :  { %839 = vmatprep.subr.bf16.mxu1 %v1109_v0 }
 0x15b   :  { %840 = vmatpush3.bf16.msra.mxu1 %v908_v51 }
 0x15c   :  { %841 = vmatprep.subr.bf16.mxu1 %v1109_v0 }
 0x15f   :  { %842 = vmatpush3.bf16.msra.mxu1 %v909_v52 }
 0x160   :  { %843 = vmatprep.subr.bf16.mxu1 %v1109_v0 }
 0x163   :  { %844 = vmatpush3.bf16.msra.mxu1 %v910_v53 }
 0x164   :  { %845 = vmatprep.subr.bf16.mxu1 %v1109_v0 }
 0x167   :  { %846 = vmatpush3.bf16.msra.mxu1 %v911_v54  ;;  %v1239_v53 = vmul.u32.u64.low 2863311531, %v665_v49  ;;  %v1240_v54 = vmul.u32.u64.high 2863311531, %v665_v49, %v1239_v53 }
 0x168   :  { %847 = vmatprep.subr.bf16.mxu1 %v1109_v0 }
 0x16b   :  { %848 = vmatpush3.bf16.msra.mxu1 %v912_v63 }
 0x16c   :  { %849 = vmatprep.subr.bf16.mxu1 %v1109_v0 }
 0x16f   :  { %850 = vmatpush3.bf16.msra.mxu1 %v913_v1 }
 0x212   :  { %v305_v56 = vpop.f32.mrf.mxu1 }
 0x213   :  { %v306_v57 = vadd.f32 %v713_v55, %v305_v56  ;;  %v672_v56 = vshrl.u32 %v1240_v54, 1 }
 0x214   :  { %v813_v58 = vpop.f32.mrf.mxu1 }
 0x215   :  { %v311_v59 = vmax.f32 %v306_v57, 0.0  ;;  %v673_v57 = vmul.u32 3, %v672_v56 }
 0x216   :  { %v308_v60 = vpop.f32.mrf.mxu1 }
 0x217   :  { %v328_v61 = vpack.c.bf16 %v311_v59, %v311_v59  ;;  %v674_v60 = vsub.s32 %v665_v49, %v673_v57 }
 0x218   :  { %v814_v62 = vpop.f32.mrf.mxu1 }
 0x219   :  { %832 = vmatmul.mubr.bf16.vlgmr.msra.gmra.mxu0 %v328_v61  ;;  %vm677_vm2 = vcmp.ne.s32.totalorder %v674_v60, 0  ;;  %vm678_vm3 = vcmp.lt.s32.totalorder %v674_v60, 0  ;;  %v680_v61 = vadd.s32 3, %v674_v60 }
 0x21a   :  { %871 = vmatprep.mubr.msk.bf16.mxu0 %vm1110_vm0, %v1109_v0  ;;  %856 = vmatpush3.bf16.msra.mxu0 %v914_v10  ;;  %vm679_vm4 = vmand %vm678_vm3, %vm677_vm2 }
 0x21b   :  { %857 = vmatprep.subr.bf16.mxu0 %v1109_v0  ;;  %v681_v62 = vsel %vm679_vm4, %v680_v61, %v674_v60 }
 0x21c   :  { %vm682_vm5 = vcmp.eq.s32.totalorder %v681_v62, 0 }
 0x21e   :  { %858 = vmatpush3.bf16.msra.mxu0 %v915_v11 }
 0x21f   :  { %859 = vmatprep.subr.bf16.mxu0 %v1109_v0 }
 0x222   :  { %860 = vmatpush3.bf16.msra.mxu0 %v916_v12 }
 0x223   :  { %861 = vmatprep.subr.bf16.mxu0 %v1109_v0 }
 0x226   :  { %862 = vmatpush3.bf16.msra.mxu0 %v917_v13 }
 0x227   :  { %863 = vmatprep.subr.bf16.mxu0 %v1109_v0 }
 0x22a   :  { %864 = vmatpush3.bf16.msra.mxu0 %v918_v14 }
 0x22b   :  { %865 = vmatprep.subr.bf16.mxu0 %v1109_v0 }
 0x22e   :  { %866 = vmatpush3.bf16.msra.mxu0 %v919_v15 }
 0x22f   :  { %867 = vmatprep.subr.bf16.mxu0 %v1109_v0 }
 0x232   :  { %868 = vmatpush3.bf16.msra.mxu0 %v920_v16 }
 0x233   :  { %869 = vmatprep.subr.bf16.mxu0 %v1109_v0 }
 0x236   :  { %870 = vmatpush3.bf16.msra.mxu0 %v921_v17 }
 0x2d9   :  { %v416_v3 = vpop.f32.mrf.mxu0 }
 0x2da   :  { %v417_v4 = vadd.f32 %v722_v2, %v416_v3 }
 0x2db   :  { %v833_v5 = vpop.f32.mrf.mxu0 }
 0x2dc   :  { %v422_v6 = vmax.f32 %v417_v4, 0.0 }
 0x2dd   :  { %v419_v7 = vpop.f32.mrf.mxu0 }
 0x2de   :  { %v439_v8 = vpack.c.bf16 %v422_v6, %v422_v6 }
 0x2df   :  { %v834_v9 = vpop.f32.mrf.mxu0 }
 0x2e0   :  { %852 = vmatmul.mubr.bf16.vlgmr.msra.gmra.mxu1 %v439_v8 }
 0x3a0   :  { %v527_v19 = vpop.f32.mrf.mxu1 }
 0x3a1   :  { %v528_v20 = vadd.f32 %v731_v18, %v527_v19 }
 0x3a2   :  { %v853_v21 = vpop.f32.mrf.mxu1 }
 0x3a3   :  { %v533_v22 = vmax.f32 %v528_v20, 0.0 }
 0x3a4   :  { %v530_v23 = vpop.f32.mrf.mxu1 }
 0x3a5   :  { %v534_v24 = vadd.f32 %v533_v22, %v1214_v43 }
 0x3a6   :  { %v854_v25 = vpop.f32.mrf.mxu1 }
 0x3a7   :  { %v535_v26 = vrot.slane %v534_v24, 4 }
 0x3a9   :  { %v536_v27 = vadd.f32 %v535_v26, %v534_v24 }
 0x3ab   :  { %v537_v28 = vrot.slane %v536_v27, 2 }
 0x3ad   :  { %v538_v29 = vadd.f32 %v537_v28, %v536_v27 }
 0x3af   :  { %v539_v30 = vrot.slane %v538_v29, 1 }
 0x3b1   :  { %v540_v31 = vadd.f32 %v539_v30, %v538_v29 }
 0x3b3   :  { %v541_v32 = vmul.f32 0.125, %v540_v31 }
 0x3b5   :  { %v542_v33 = vsub.f32 %v534_v24, %v541_v32 }
 0x3b7   :  { %v543_v34 = vmul.f32 %v542_v33, %v542_v33 }
 0x3b9   :  { %v544_v0 = vrot.slane %v543_v34, 4 }
 0x3bb   :  { %v545_v35 = vadd.f32 %v544_v0, %v543_v34 }
 0x3bd   :  { %v546_v36 = vrot.slane %v545_v35, 2 }
 0x3bf   :  { %v547_v37 = vadd.f32 %v546_v36, %v545_v35 }
 0x3c1   :  { %v548_v38 = vrot.slane %v547_v37, 1 }
 0x3c3   :  { %v549_v39 = vadd.f32 %v548_v38, %v547_v37 }
 0x3c5   :  { %v550_v40 = vmul.f32 0.125, %v549_v39 }
 0x3c7   :  { %v551_v41 = vadd.f32 1e-05, %v550_v40 }
 0x3c9   :  { %924 = vrsqrt.f32 %v551_v41 }
 0x3d6   :  { %v925_v42 = vpop.eup %924 }
 0x3d7   :  { %v553_v43 = vmul.f32 %v925_v42, %v542_v33 }
 0x3d9   :  { %v570_v44 = vpack.c.bf16 %v553_v43, %v553_v43 }
 0x3db   :  { %872 = vmatmul.mubr.bf16.vlgmr.msra.gmra.mxu0 %v570_v44 }
 0x49b   :  { %v658_v47 = vpop.f32.mrf.mxu0 }
 0x49c   :  { %v659_v48 = vadd.f32 %v740_v46, %v658_v47 }
 0x49d   :  { %v873_v50 = vpop.f32.mrf.mxu0 }
 0x49e   :  { %v749_v51 = vmul.f32 -1.442695, %v659_v48 }
 0x49f   :  { %v661_v52 = vpop.f32.mrf.mxu0 }
 0x4a0   :  { %926 = vpow2.f32 %v749_v51 }
 0x4a1   :  { %v874_v55 = vpop.f32.mrf.mxu0 }
 0x4ad   :  { %v927_v58 = vpop.eup %926 }
 0x4ae   :  { %v686_v59 = vadd.f32 1.0, %v927_v58 }
 0x4b0   :  { %928 = vrcp.f32 %v686_v59 }
 0x4bd   :  { %v929_v63 = vpop.eup %928 }
 0x4be   :  { %v750_v1 = vadd.f32 -1.0, %v929_v63 }
 0x4c0   :  { %v690_v2 = vsel %vm682_vm5, %v750_v1, %v659_v48 }
 0x4c1   :  { %691 = vst [vmem:[#allocation14] sm:$0xff] %v690_v2 }
 0x4c2   :  { %1081 = shalt.err (!%p1078_p11)
}
 0x4c3   :  { %701 = dma.vmem_to_hbm [thread:$0]  %s699_s6, 128, %s1253_s7, [#allocation4]  }
 0x4c4   :  { %1098 = dma.done.wait [#allocation4], 128  }
 0x4c5   :  { %1099 = vsyncadd [#allocation4], 4294967168 }
 0x4c6   :  { %705 = vsyncpa [#allocation3], 1 }
 0x4c7   :  { %706 = vsyncpa [#allocation6], 1 }
 0x4c8   :  { %707 = vsyncpa [#allocation9], 1 }
 0x4c9   :  { %708 = vsyncpa [#allocation12], 1 }
 0x4ca   :  { %709 = vsyncpa [#allocation4], 1 }

</bundles_post_ra>
